<compile_context>
chip_gen: v5e
topology: v5e:2x2
jax: 0.10.0
libtpu: 0.0.40
codegen_flags: <defaults>
</compile_context>

<pallas_src>
import jax
import jax.numpy as jnp
from jax import lax
from jax.experimental import pallas as pl
from jax.experimental.pallas import tpu as pltpu


# ----------------------------------------------------------------------------
# Pallas kernel: fused Linear(H -> D) + per-token L2 normalize
# ----------------------------------------------------------------------------
def _colbert_proj_kernel(x_ref, w_ref, b_ref, o_ref):
    # x_ref: (TM, H) bf16 token hidden-state tile
    # w_ref: (H, D)  bf16 projection weight (constant index_map -> VMEM resident)
    # b_ref: (1, D)  f32 bias
    # o_ref: (TM, D) L2-normalized projected embeddings
    proj = jnp.dot(x_ref[...], w_ref[...],
                   preferred_element_type=jnp.float32) + b_ref[...]
    sq = jnp.sum(proj * proj, axis=-1, keepdims=True)
    # torch F.normalize(p=2, dim=-1, eps=1e-12) == clamp squared norm at 1e-24
    inv = lax.rsqrt(jnp.maximum(sq, 1e-24))
    o_ref[...] = (proj * inv).astype(o_ref.dtype)


# ----------------------------------------------------------------------------
# Tile sizing helpers
# ----------------------------------------------------------------------------
def _clamp_tm_for_vmem(tm, H, D, x_bytes, out_bytes, budget_bytes=12 * 1024 * 1024):
    """Keep double-buffered x/out tiles + resident weight under a conservative
    VMEM budget that fits the default scoped limit on v5e/v6e/v7x."""
    fixed = H * D * 2 * 2 + 2 * D * 4               # weight (2 bufs) + bias
    per_row = 2 * H * x_bytes + 2 * D * out_bytes   # x tile + out tile, double-buffered
    max_rows = max(16, (budget_bytes - fixed) // per_row)
    return max(16, min(tm, (max_rows // 16) * 16))


def _choose_tm(M, tm_max):
    """Pick the token-tile size; avoid padding/slicing entirely."""
    if M <= tm_max:
        # Single tile.  A block dim equal to the full array dim is always
        # layout-legal, so no rounding/padding is needed.
        return M
    tm = max(16, (tm_max // 16) * 16)
    # Prefer a tile that divides M exactly so there is no masked ragged tile.
    for cand in range(tm, max(16, tm // 2) - 1, -16):
        if M % cand == 0:
            return cand
    return tm  # ragged last tile: Pallas masks the out-of-bounds writes


# ----------------------------------------------------------------------------
# Wrapper
# ----------------------------------------------------------------------------
def colbert_project_normalize(hidden, weight, bias, *, tm=1024,
                              out_dtype=jnp.float32):
    """hidden: (B, S, H) (preferably bf16); weight: (H, D); bias: (D,).
    Returns (B, S, D) in `out_dtype` (f32 default matches the PyTorch module;
    bf16 halves output write traffic if downstream scoring tolerates it)."""
    B, S, H = hidden.shape
    D = weight.shape[1]
    M = B * S

    # Metadata-only reshape — no HBM copy.
    x2d = hidden.reshape(M, H)
    if x2d.dtype != jnp.bfloat16:
        # Prefer producing hidden in bf16 at the source (see colbert_forward);
        # this fallback costs one extra HBM pass over (M, H).
        x2d = x2d.astype(jnp.bfloat16)
    w_bf = weight.astype(jnp.bfloat16)          # tiny (H, D), one-time
    b2d = bias.reshape(1, D).astype(jnp.float32)

    out_bytes = jnp.dtype(out_dtype).itemsize
    tm_max = _clamp_tm_for_vmem(tm, H, D, x_bytes=2, out_bytes=out_bytes)
    tm_eff = _choose_tm(M, tm_max)
    grid = pl.cdiv(M, tm_eff)

    out2d = pl.pallas_call(
        _colbert_proj_kernel,
        out_shape=jax.ShapeDtypeStruct((M, D), out_dtype),
        grid_spec=pltpu.PrefetchScalarGridSpec(
            num_scalar_prefetch=0,
            grid=(grid,),
            in_specs=[
                pl.BlockSpec((tm_eff, H), lambda i: (i, 0)),   # token tile
                pl.BlockSpec((H, D), lambda i: (0, 0)),        # full weight (resident)
                pl.BlockSpec((1, D), lambda i: (0, 0)),        # bias (resident)
            ],
            out_specs=pl.BlockSpec((tm_eff, D), lambda i: (i, 0)),
        ),
        compiler_params=pltpu.CompilerParams(
            dimension_semantics=("parallel",)),
    )(x2d, w_bf, b2d)

    # Metadata-only reshape back — no HBM copy, no slice.
    return out2d.reshape(B, S, D)


def colbert_forward(input_ids, attention_mask, params):
    """Synthetic ColBERTv2.forward: embedding-stub 'bert' + fused proj/normalize."""
    # TODO(synk): stand-in for BERT last_hidden_state (pretrained encoder not
    # reproducible without a checkpoint).  The table is stored in bf16 so the
    # hidden tensor is already bf16 at the source — no wrapper cast pass.
    hidden = jnp.take(params["embed_table"], input_ids, axis=0)   # (B, S, H) bf16
    # attention_mask is accepted (as in the PyTorch forward) but, like the
    # original, does not alter the projected output of valid positions.
    del attention_mask
    return colbert_project_normalize(hidden, params["w"], params["b"])


if __name__ == "__main__":
    # Small shapes consistent with the module: batch=2, seq=32 (max_query_length),
    # hidden=256 (stand-in for bert hidden_size), dim=128 (ColBERT dim).
    B, S, H, D, VOCAB = 2, 32, 256, 128, 100

    key = jax.random.PRNGKey(0)
    k_emb, k_w, k_b, k_ids = jax.random.split(key, 4)

    params = {
        # bf16 at the source: the kernel never reads an f32 (B, S, H) tensor.
        "embed_table": (jax.random.normal(k_emb, (VOCAB, H), jnp.float32)
                        * 0.02).astype(jnp.bfloat16),
        "w": jax.random.normal(k_w, (H, D), jnp.float32) * (1.0 / jnp.sqrt(H)),
        "b": jax.random.normal(k_b, (D,), jnp.float32) * 0.01,
    }

    input_ids = jax.random.randint(k_ids, (B, S), 0, VOCAB, dtype=jnp.int32)
    attention_mask = jnp.ones((B, S), dtype=jnp.int32)

    out = jax.block_until_ready(colbert_forward(input_ids, attention_mask, params))

    # Correctness check against a plain-JAX f32 reference.  The kernel uses
    # bf16 MXU operands (f32 accumulation), so the tolerance is relaxed.
    hidden_ref = jnp.take(params["embed_table"], input_ids, axis=0).astype(jnp.float32)
    proj_ref = hidden_ref @ params["w"] + params["b"]
    nrm = jnp.sqrt(jnp.sum(proj_ref * proj_ref, axis=-1, keepdims=True))
    ref = proj_ref / jnp.maximum(nrm, 1e-12)

    assert out.shape == (B, S, D)
    assert not bool(jnp.any(jnp.isnan(out)))
    assert bool(jnp.allclose(out, ref, atol=5e-3, rtol=5e-2))

    print("KERNEL_OK")
</pallas_src>

<mosaic_0001>
module attributes {stable_mosaic.version = 11 : i64} {
  func.func @_colbert_proj_kernel(%arg0: i32, %arg1: memref<64x256xbf16, #tpu.memory_space<vmem>>, %arg2: memref<256x128xbf16, #tpu.memory_space<vmem>>, %arg3: memref<1x128xf32, #tpu.memory_space<vmem>>, %arg4: memref<64x128xf32, #tpu.memory_space<vmem>>) attributes {dimension_semantics = [#tpu.dimension_semantics<parallel>], iteration_bounds = array<i64: 1>, scalar_prefetch = 0 : i64, scratch_operands = 0 : i64, tpu.core_type = #tpu.core_type<tc>, window_params = [{transform_indices = @transform_0, window_bounds = array<i64: 64, 256>}, {pipeline_mode = #tpu.pipeline_mode<synchronous>, transform_indices = @transform_1, window_bounds = array<i64: 256, 128>}, {pipeline_mode = #tpu.pipeline_mode<synchronous>, transform_indices = @transform_2, window_bounds = array<i64: 1, 128>}, {transform_indices = @transform_3, window_bounds = array<i64: 64, 128>}]} {
    %c0 = arith.constant 0 : index
    %c0_0 = arith.constant 0 : index
    %0 = vector.load %arg1[%c0, %c0_0] : memref<64x256xbf16, #tpu.memory_space<vmem>>, vector<64x256xbf16>
    %c0_1 = arith.constant 0 : index
    %c0_2 = arith.constant 0 : index
    %1 = vector.load %arg2[%c0_1, %c0_2] : memref<256x128xbf16, #tpu.memory_space<vmem>>, vector<256x128xbf16>
    %cst = arith.constant dense<0.000000e+00> : vector<64x128xf32>
    %2 = tpu.matmul %0, %1, %cst {dimension_numbers = #tpu.dot_dimension_numbers<[1], [0], [0], [1], [0, 0, 1, 1], [], []>} : vector<64x256xbf16>, vector<256x128xbf16>, vector<64x128xf32> -> vector<64x128xf32>
    %c0_3 = arith.constant 0 : index
    %c0_4 = arith.constant 0 : index
    %3 = vector.load %arg3[%c0_3, %c0_4] : memref<1x128xf32, #tpu.memory_space<vmem>>, vector<1x128xf32>
    %4 = vector.broadcast %3 : vector<1x128xf32> to vector<64x128xf32>
    %5 = arith.addf %2, %4 : vector<64x128xf32>
    %6 = arith.mulf %5, %5 : vector<64x128xf32>
    %cst_5 = arith.constant dense<0.000000e+00> : vector<64xf32>
    %7 = vector.multi_reduction <add>, %6, %cst_5 [1] : vector<64x128xf32> to vector<64xf32>
    %8 = vector.shape_cast %7 : vector<64xf32> to vector<64x1xf32>
    %cst_6 = arith.constant 1.000000e-24 : f32
    %9 = vector.broadcast %cst_6 : f32 to vector<64x1xf32>
    %10 = arith.maximumf %8, %9 : vector<64x1xf32>
    %11 = math.rsqrt %10 : vector<64x1xf32>
    %12 = vector.broadcast %11 : vector<64x1xf32> to vector<64x128xf32>
    %13 = arith.mulf %5, %12 : vector<64x128xf32>
    %c0_7 = arith.constant 0 : index
    %c0_8 = arith.constant 0 : index
    %14 = vector.load %arg4[%c0_7, %c0_8] : memref<64x128xf32, #tpu.memory_space<vmem>>, vector<64x128xf32>
    tpu.vector_store %arg4[%c0_7, %c0_8], %13 {strides = array<i32>} : memref<64x128xf32, #tpu.memory_space<vmem>>, vector<64x128xf32>,
    return
  }
  func.func @transform_0(%arg0: i32) -> (i32, i32) {
    %c0_i32 = arith.constant 0 : i32
    %c0_i32_0 = arith.constant 0 : i32
    return %arg0, %c0_i32 : i32, i32
  }
  func.func @transform_1(%arg0: i32) -> (i32, i32) {
    %c0_i32 = arith.constant 0 : i32
    %c0_i32_0 = arith.constant 0 : i32
    %c0_i32_1 = arith.constant 0 : i32
    return %c0_i32, %c0_i32_0 : i32, i32
  }
  func.func @transform_2(%arg0: i32) -> (i32, i32) {
    %c0_i32 = arith.constant 0 : i32
    %c0_i32_0 = arith.constant 0 : i32
    %c0_i32_1 = arith.constant 0 : i32
    return %c0_i32, %c0_i32_0 : i32, i32
  }
  func.func @transform_3(%arg0: i32) -> (i32, i32) {
    %c0_i32 = arith.constant 0 : i32
    %c0_i32_0 = arith.constant 0 : i32
    return %arg0, %c0_i32 : i32, i32
  }
}

</mosaic_0001>

<bundles_post_ra>
// kernel: tpu_custom_call.1
= control target key start
LH: loop header
LB: loop body
LE: loop exit
PB: predicated region body
PF: predicated region fallthrough
CT: control target
= control target key end

     0   :  { %8 = vsyncpa [#allocation3], 0  ;;  %s756_s0 = inlined_call_operand.hbm [shape: bf16[64,256], index: 0, kind: input, shape index: {}]   ;;  %s757_s1 = inlined_call_operand.hbm [shape: bf16[256,128], index: 1, kind: input, shape index: {}]   ;;  %s758_s2 = inlined_call_operand.vmem [shape: f32[1,128], index: 2, kind: input, shape index: {}]   ;;  %s759_s3 = inlined_call_operand.hbm [shape: f32[64,128], index: 3, kind: output, shape index: {}]  }
   0x1   :  { %9 = vsyncpa [#allocation6], 0 }
   0x2   :  { %10 = vsyncpa [#allocation4], 0  ;;  %s15_s14 = sshll.u32 %s756_s0, 4  ;;  %s671_s15 = smov [#allocation2]   ;;  %s16_s14 = int_to_ptr.hbm [resolvable:$true] %s15_s14 }
   0x3   :  { %s17_s16 = sshll.u32 %s671_s15, 4  ;;  %s28_s19 = sshll.u32 %s757_s1, 4  ;;  %s18_s16 = int_to_ptr.vmem [resolvable:$true] %s17_s16  ;;  %s29_s19 = int_to_ptr.hbm [resolvable:$true] %s28_s19 }
   0x4   :  { %s672_s20 = smov 128   ;;  %s673_s21 = smov 8  }
   0x5   :  { %23 = dma.hbm_to_vmem [thread:$0]  %s16_s14, 1024, %s18_s16, [#allocation3], %s672_s20, %s672_s20, %s673_s21  }
   0x6   :  { %s674_s22 = smov [#allocation5]   ;;  %s675_s24 = smov 64  }
   0x7   :  { %s30_s23 = sshll.u32 %s674_s22, 4  ;;  %s676_s0 = smov 4   ;;  %s31_s23 = int_to_ptr.vmem [resolvable:$true] %s30_s23 }
   0x8   :  { %36 = dma.hbm_to_vmem [thread:$0]  %s29_s19, 2048, %s31_s23, [#allocation6], %s675_s24, %s675_s24, %s676_s0  }
   0x9   :  { %665 = dma.done.wait [#allocation3], 1024  }
   0xa   :  { %666 = vsyncadd [#allocation3], 4294966272 }
   0xb   :  { %667 = dma.done.wait [#allocation6], 2048  }
   0xc   :  { %668 = vsyncadd [#allocation6], 4294965248  ;;  %v544_v0 = vld [vmem:[#allocation5 + $0x38] sm:$0xff]  ;;  %v543_v2 = vld [vmem:[#allocation5 + $0x30] sm:$0xff]  ;;  %s419_s29 = sshll.u32 %s759_s3, 4  ;;  %s420_s29 = int_to_ptr.hbm [resolvable:$true] %s419_s29 }
   0xd   :  { %v552_v1 = vld [vmem:[#allocation5 + $0x78] sm:$0xff]  ;;  %227 = vmatpush.bf16.msra.mxu0 %v544_v0  ;;  %553 = vmatpush.bf16.msra.mxu2 %v544_v0  ;;  %v551_v3 = vld [vmem:[#allocation5 + $0x70] sm:$0xff]  ;;  %v542_v4 = vld [vmem:[#allocation5 + $0x28] sm:$0xff] }
   0xe   :  { %256 = vmatpush.bf16.msra.mxu1 %v552_v1  ;;  %561 = vmatpush.bf16.msra.mxu3 %v552_v1  ;;  %v550_v5 = vld [vmem:[#allocation5 + $0x68] sm:$0xff]  ;;  %v541_v6 = vld [vmem:[#allocation5 + $0x20] sm:$0xff]  ;;  %v540_v8 = vld [vmem:[#allocation5 + $0x18] sm:$0xff] }
   0xf   :  { %v549_v7 = vld [vmem:[#allocation5 + $0x60] sm:$0xff]  ;;  %v548_v9 = vld [vmem:[#allocation5 + $0x58] sm:$0xff]  ;;  %v539_v10 = vld [vmem:[#allocation5 + $0x10] sm:$0xff] }
  0x10   :  { %v547_v11 = vld [vmem:[#allocation5 + $0x50] sm:$0xff]  ;;  %v538_v12 = vld [vmem:[#allocation5 + $0x8] sm:$0xff]  ;;  %v537_v14 = vld [vmem:[#allocation5] sm:$0xff] }
  0x11   :  { %228 = vmatpush.bf16.msra.mxu0 %v543_v2  ;;  %554 = vmatpush.bf16.msra.mxu2 %v543_v2  ;;  %v546_v13 = vld [vmem:[#allocation5 + $0x48] sm:$0xff]  ;;  %v545_v15 = vld [vmem:[#allocation5 + $0x40] sm:$0xff]  ;;  %v443_v28 = vld [vmem:[#allocation2 + $0x10] sm:$0xf] }
  0x12   :  { %257 = vmatpush.bf16.msra.mxu1 %v551_v3  ;;  %562 = vmatpush.bf16.msra.mxu3 %v551_v3  ;;  %v435_v16 = vld [vmem:[#allocation2] sm:$0xf]  ;;  %v530_v17 = vld [vmem:[#allocation2 + $0x4] sm:$0xf0]  ;;  %v529_v20 = vld [vmem:[#allocation2 + $0x4] sm:$0xf] }
  0x13   :  { %v451_v18 = vld [vmem:[#allocation2 + $0x20] sm:$0xf]  ;;  %v534_v19 = vld [vmem:[#allocation2 + $0x24] sm:$0xf0]  ;;  %v437_v21 = vld [vmem:[#allocation2 + $0x8] sm:$0xf0]  ;;  %v436_v24 = vor.u32 %v530_v17, %v435_v16 }
  0x14   :  { %v533_v22 = vld [vmem:[#allocation2 + $0x24] sm:$0xf]  ;;  %v453_v23 = vld [vmem:[#allocation2 + $0x28] sm:$0xf0]  ;;  %v452_v25 = vor.u32 %v534_v19, %v451_v18  ;;  %v440_v26 = vor.u32 %v529_v20, %v437_v21  ;;  %v532_v29 = vld [vmem:[#allocation2 + $0x14] sm:$0xf0] }
  0x15   :  { %229 = vmatpush.bf16.msra.mxu0 %v542_v4  ;;  %555 = vmatpush.bf16.msra.mxu2 %v542_v4  ;;  %v456_v27 = vor.u32 %v533_v22, %v453_v23  ;;  %v459_v30 = vld [vmem:[#allocation2 + $0x30] sm:$0xf]  ;;  %v536_v31 = vld [vmem:[#allocation2 + $0x34] sm:$0xf0]  ;;  %v531_v32 = vld [vmem:[#allocation2 + $0x14] sm:$0xf]  ;;  %v444_v36 = vor.u32 %v532_v29, %v443_v28 }
  0x16   :  { %258 = vmatpush.bf16.msra.mxu1 %v550_v5  ;;  %563 = vmatpush.bf16.msra.mxu3 %v550_v5  ;;  %v445_v33 = vld [vmem:[#allocation2 + $0x18] sm:$0xf0]  ;;  %v535_v34 = vld [vmem:[#allocation2 + $0x34] sm:$0xf]  ;;  %v460_v37 = vor.u32 %v536_v31, %v459_v30  ;;  %v576_v40 = vld [vmem:[%s758_s2] ss:$0 sm:$0xff] }
  0x17   :  { %v461_v35 = vld [vmem:[#allocation2 + $0x38] sm:$0xf0]  ;;  %v448_v38 = vor.u32 %v531_v32, %v445_v33  ;;  %s677_s2 = smov [#allocation7]  }
  0x18   :  { %v464_v39 = vor.u32 %v535_v34, %v461_v35  ;;  %s417_s26 = sshll.u32 %s677_s2, 4  ;;  %s418_s26 = int_to_ptr.vmem [resolvable:$true] %s417_s26 }
  0x19   :  { %230 = vmatpush.bf16.msra.mxu0 %v541_v6  ;;  %556 = vmatpush.bf16.msra.mxu2 %v541_v6 }
  0x1a   :  { %259 = vmatpush.bf16.msra.mxu1 %v549_v7  ;;  %564 = vmatpush.bf16.msra.mxu3 %v549_v7 }
  0x1d   :  { %231 = vmatpush.bf16.msra.mxu0 %v540_v8  ;;  %557 = vmatpush.bf16.msra.mxu2 %v540_v8 }
  0x1e   :  { %260 = vmatpush.bf16.msra.mxu1 %v548_v9  ;;  %565 = vmatpush.bf16.msra.mxu3 %v548_v9 }
  0x21   :  { %232 = vmatpush.bf16.msra.mxu0 %v539_v10  ;;  %558 = vmatpush.bf16.msra.mxu2 %v539_v10 }
  0x22   :  { %261 = vmatpush.bf16.msra.mxu1 %v547_v11  ;;  %566 = vmatpush.bf16.msra.mxu3 %v547_v11 }
  0x25   :  { %233 = vmatpush.bf16.msra.mxu0 %v538_v12  ;;  %559 = vmatpush.bf16.msra.mxu2 %v538_v12 }
  0x26   :  { %262 = vmatpush.bf16.msra.mxu1 %v546_v13  ;;  %567 = vmatpush.bf16.msra.mxu3 %v546_v13 }
  0x29   :  { %234 = vmatpush.bf16.msra.mxu0 %v537_v14  ;;  %560 = vmatpush.bf16.msra.mxu2 %v537_v14 }
  0x2a   :  { %263 = vmatpush.bf16.msra.mxu1 %v545_v15  ;;  %568 = vmatpush.bf16.msra.mxu3 %v545_v15 }
  0x2c   :  { %235 = vmatmul.bf16.vlgmr.msra.gmra.mxu0 %v436_v24  ;;  %245 = vmatmul.bf16.vlgmr.msra.gmra.mxu2 %v452_v25 }
  0x2d   :  { %264 = vmatmul.bf16.vlgmr.msra.gmra.mxu1 %v440_v26  ;;  %274 = vmatmul.bf16.vlgmr.msra.gmra.mxu3 %v456_v27 }
  0x3c   :  { %240 = vmatmul.bf16.gmra.mxu0 %v444_v36  ;;  %250 = vmatmul.bf16.gmra.mxu2 %v460_v37 }
  0x3d   :  { %269 = vmatmul.bf16.gmra.mxu1 %v448_v38  ;;  %279 = vmatmul.bf16.gmra.mxu3 %v464_v39 }
  0xa9   :  { %v236_v41 = vpop.f32.mrf.mxu0 }
  0xaa   :  { %v237_v42 = vadd.f32 %v576_v40, %v236_v41  ;;  %v265_v43 = vpop.f32.mrf.mxu1 }
  0xac   :  { %v710_v44 = vadd.f32 %v265_v43, %v237_v42 }
  0xae   :  { %v285_v45 = vmul.f32 %v710_v44, %v710_v44 }
  0xaf   :  { %v246_v46 = vpop.f32.mrf.mxu2 }
  0xb0   :  { %v247_v47 = vadd.f32 %v576_v40, %v246_v46  ;;  %v275_v48 = vpop.f32.mrf.mxu3  ;;  %293 = vadd.xlane.f32.xlu0 %v285_v45 }
  0xb1   :  { %v238_v49 = vpop.f32.mrf.mxu0 }
  0xb2   :  { %v714_v50 = vadd.f32 %v275_v48, %v247_v47  ;;  %v239_v51 = vadd.f32 %v576_v40, %v238_v49  ;;  %v267_v52 = vpop.f32.mrf.mxu1 }
  0xb4   :  { %v716_v53 = vadd.f32 %v267_v52, %v239_v51  ;;  %v289_v54 = vmul.f32 %v714_v50, %v714_v50 }
  0xb6   :  { %301 = vadd.xlane.f32.xlu2 %v289_v54  ;;  %v286_v55 = vmul.f32 %v716_v53, %v716_v53 }
  0xb7   :  { %v248_v56 = vpop.f32.mrf.mxu2 }
  0xb8   :  { %v249_v57 = vadd.f32 %v576_v40, %v248_v56  ;;  %v277_v58 = vpop.f32.mrf.mxu3  ;;  %295 = vadd.xlane.f32.xlu0 %v286_v55 }
  0xb9   :  { %v241_v59 = vpop.f32.mrf.mxu0 }
  0xba   :  { %v722_v60 = vadd.f32 %v277_v58, %v249_v57  ;;  %v242_v61 = vadd.f32 %v576_v40, %v241_v59  ;;  %v270_v62 = vpop.f32.mrf.mxu1 }
  0xbc   :  { %v724_v63 = vadd.f32 %v270_v62, %v242_v61  ;;  %v290_v0 = vmul.f32 %v722_v60, %v722_v60 }
  0xbe   :  { %303 = vadd.xlane.f32.xlu2 %v290_v0  ;;  %v287_v1 = vmul.f32 %v724_v63, %v724_v63 }
  0xbf   :  { %v251_v2 = vpop.f32.mrf.mxu2 }
  0xc0   :  { %v252_v3 = vadd.f32 %v576_v40, %v251_v2  ;;  %v280_v4 = vpop.f32.mrf.mxu3  ;;  %297 = vadd.xlane.f32.xlu1 %v287_v1 }
  0xc1   :  { %v243_v5 = vpop.f32.mrf.mxu0 }
  0xc2   :  { %v730_v6 = vadd.f32 %v280_v4, %v252_v3  ;;  %v244_v7 = vadd.f32 %v576_v40, %v243_v5  ;;  %v272_v8 = vpop.f32.mrf.mxu1 }
  0xc4   :  { %v732_v9 = vadd.f32 %v272_v8, %v244_v7  ;;  %v291_v10 = vmul.f32 %v730_v6, %v730_v6 }
  0xc6   :  { %305 = vadd.xlane.f32.xlu0 %v291_v10  ;;  %v288_v11 = vmul.f32 %v732_v9, %v732_v9 }
  0xc7   :  { %v253_v12 = vpop.f32.mrf.mxu2 }
  0xc8   :  { %v254_v13 = vadd.f32 %v576_v40, %v253_v12  ;;  %299 = vadd.xlane.f32.xlu1 %v288_v11  ;;  %v282_v14 = vpop.f32.mrf.mxu3 }
  0xca   :  { %v738_v15 = vadd.f32 %v282_v14, %v254_v13 }
  0xcc   :  { %v292_v16 = vmul.f32 %v738_v15, %v738_v15 }
  0xd0   :  { %307 = vadd.xlane.f32.xlu1 %v292_v16 }
 0x123   :  { %v294_v17 = vpop.xlane.xlu0 %293 }
 0x124   :  { %v309_v18 = vmax.f32 %v294_v17, 1e-24 }
 0x126   :  { %577 = vrsqrt.f32 %v309_v18  ;;  %vm323_vm1 = vweird.f32 %v309_v18 }
 0x129   :  { %v302_v19 = vpop.xlane.xlu2 %301 }
 0x12a   :  { %v313_v20 = vmax.f32 %v302_v19, 1e-24 }
 0x12b   :  { %v296_v21 = vpop.xlane.xlu0 %295 }
 0x12c   :  { %v578_v22 = vpop.eup %577  ;;  %579 = vrsqrt.f32 %v313_v20  ;;  %v310_v23 = vmax.f32 %v296_v21, 1e-24  ;;  %vm363_vm4 = vweird.f32 %v313_v20 }
 0x12d   :  { %v318_v24 = vmul.f32 %v578_v22, %v309_v18  ;;  %vm324_vm0 = vweird.f32 %v578_v22 }
 0x12e   :  { %581 = vrsqrt.f32 %v310_v23  ;;  %vm325_vm2 = vmor %vm323_vm1, %vm324_vm0  ;;  %vm333_vm7 = vweird.f32 %v310_v23 }
 0x12f   :  { %v319_v25 = vmul.f32 %v578_v22, %v318_v24 }
 0x131   :  { %v320_v26 = vmul.f32 0.5, %v319_v25  ;;  %v304_v27 = vpop.xlane.xlu2 %303 }
 0x132   :  { %v580_v28 = vpop.eup %579  ;;  %v314_v29 = vmax.f32 %v304_v27, 1e-24 }
 0x133   :  { %v321_v30 = vsub.f32 1.5, %v320_v26  ;;  %v358_v31 = vmul.f32 %v580_v28, %v313_v20  ;;  %v298_v32 = vpop.xlane.xlu1 %297  ;;  %vm364_vm3 = vweird.f32 %v580_v28 }
 0x134   :  { %v582_v33 = vpop.eup %581  ;;  %583 = vrsqrt.f32 %v314_v29  ;;  %v311_v34 = vmax.f32 %v298_v32, 1e-24  ;;  %vm365_vm6 = vmor %vm363_vm4, %vm364_vm3  ;;  %vm373_vm10 = vweird.f32 %v314_v29 }
 0x135   :  { %v322_v35 = vmul.f32 %v578_v22, %v321_v30  ;;  %v359_v36 = vmul.f32 %v580_v28, %v358_v31  ;;  %v328_v37 = vmul.f32 %v582_v33, %v310_v23  ;;  %vm334_vm5 = vweird.f32 %v582_v33 }
 0x136   :  { %585 = vrsqrt.f32 %v311_v34  ;;  %vm335_vm8 = vmor %vm333_vm7, %vm334_vm5  ;;  %vm343_vm13 = vweird.f32 %v311_v34 }
 0x137   :  { %v326_v38 = vsel %vm325_vm2, %v578_v22, %v322_v35  ;;  %v360_v39 = vmul.f32 0.5, %v359_v36  ;;  %v329_v40 = vmul.f32 %v582_v33, %v328_v37 }
 0x138   :  { %v397_v41 = vmul.f32 %v326_v38, %v710_v44 }
 0x139   :  { %v361_v42 = vsub.f32 1.5, %v360_v39  ;;  %v330_v43 = vmul.f32 0.5, %v329_v40  ;;  %v306_v45 = vpop.xlane.xlu0 %305 }
 0x13a   :  { %v584_v46 = vpop.eup %583  ;;  %405 = vst [vmem:[#allocation7] sm:$0xff] %v397_v41  ;;  %v315_v47 = vmax.f32 %v306_v45, 1e-24 }
 0x13b   :  { %v362_v48 = vmul.f32 %v580_v28, %v361_v42  ;;  %v331_v49 = vsub.f32 1.5, %v330_v43  ;;  %v368_v51 = vmul.f32 %v584_v46, %v314_v29  ;;  %v300_v52 = vpop.xlane.xlu1 %299  ;;  %vm374_vm9 = vweird.f32 %v584_v46 }
 0x13c   :  { %v586_v54 = vpop.eup %585  ;;  %587 = vrsqrt.f32 %v315_v47  ;;  %v312_v55 = vmax.f32 %v300_v52, 1e-24  ;;  %vm375_vm12 = vmor %vm373_vm10, %vm374_vm9  ;;  %vm383_vm0 = vweird.f32 %v315_v47 }
 0x13d   :  { %v366_v56 = vsel %vm365_vm6, %v580_v28, %v362_v48  ;;  %v332_v44 = vmul.f32 %v582_v33, %v331_v49  ;;  %v369_v57 = vmul.f32 %v584_v46, %v368_v51  ;;  %v338_v58 = vmul.f32 %v586_v54, %v311_v34 }
 0x13e   :  { %v401_v59 = vmul.f32 %v366_v56, %v714_v50  ;;  %589 = vrsqrt.f32 %v312_v55  ;;  %vm344_vm11 = vweird.f32 %v586_v54  ;;  %vm353_vm3 = vweird.f32 %v312_v55 }
 0x13f   :  { %v336_v61 = vsel %vm335_vm8, %v582_v33, %v332_v44  ;;  %v370_v62 = vmul.f32 0.5, %v369_v57  ;;  %v339_v0 = vmul.f32 %v586_v54, %v338_v58  ;;  %vm345_vm14 = vmor %vm343_vm13, %vm344_vm11 }
 0x140   :  { %409 = vst [vmem:[#allocation7 + $0x20] sm:$0xff] %v401_v59  ;;  %v398_v1 = vmul.f32 %v336_v61, %v716_v53 }
 0x141   :  { %v371_v2 = vsub.f32 1.5, %v370_v62  ;;  %v340_v3 = vmul.f32 0.5, %v339_v0 }
 0x142   :  { %v588_v4 = vpop.eup %587  ;;  %406 = vst [vmem:[#allocation7 + $0x8] sm:$0xff] %v398_v1 }
 0x143   :  { %v372_v5 = vmul.f32 %v584_v46, %v371_v2  ;;  %v341_v7 = vsub.f32 1.5, %v340_v3  ;;  %v378_v8 = vmul.f32 %v588_v4, %v315_v47  ;;  %v308_v10 = vpop.xlane.xlu1 %307  ;;  %vm384_vm15 = vweird.f32 %v588_v4 }
 0x144   :  { %v590_v50 = vpop.eup %589  ;;  %v316_v11 = vmax.f32 %v308_v10, 1e-24  ;;  %vm385_vm2 = vmor %vm383_vm0, %vm384_vm15 }
 0x145   :  { %v376_v12 = vsel %vm375_vm12, %v584_v46, %v372_v5  ;;  %v342_v13 = vmul.f32 %v586_v54, %v341_v7  ;;  %v379_v14 = vmul.f32 %v588_v4, %v378_v8  ;;  %v348_v16 = vmul.f32 %v590_v50, %v312_v55 }
 0x146   :  { %v402_v53 = vmul.f32 %v376_v12, %v722_v60  ;;  %591 = vrsqrt.f32 %v316_v11  ;;  %vm354_vm1 = vweird.f32 %v590_v50  ;;  %vm393_vm6 = vweird.f32 %v316_v11 }
 0x147   :  { %v346_v17 = vsel %vm345_vm14, %v586_v54, %v342_v13  ;;  %v380_v18 = vmul.f32 0.5, %v379_v14  ;;  %v349_v19 = vmul.f32 %v590_v50, %v348_v16  ;;  %vm355_vm4 = vmor %vm353_vm3, %vm354_vm1 }
 0x148   :  { %410 = vst [vmem:[#allocation7 + $0x28] sm:$0xff] %v402_v53  ;;  %v399_v20 = vmul.f32 %v346_v17, %v724_v63 }
 0x149   :  { %v381_v21 = vsub.f32 1.5, %v380_v18  ;;  %v350_v22 = vmul.f32 0.5, %v349_v19 }
 0x14a   :  { %407 = vst [vmem:[#allocation7 + $0x10] sm:$0xff] %v399_v20 }
 0x14b   :  { %v382_v23 = vmul.f32 %v588_v4, %v381_v21  ;;  %v351_v24 = vsub.f32 1.5, %v350_v22 }
 0x14c   :  { %v592_v25 = vpop.eup %591 }
 0x14d   :  { %v386_v26 = vsel %vm385_vm2, %v588_v4, %v382_v23  ;;  %v352_v60 = vmul.f32 %v590_v50, %v351_v24  ;;  %v388_v27 = vmul.f32 %v592_v25, %v316_v11  ;;  %vm394_vm5 = vweird.f32 %v592_v25 }
 0x14e   :  { %v403_v28 = vmul.f32 %v386_v26, %v730_v6  ;;  %vm395_vm7 = vmor %vm393_vm6, %vm394_vm5 }
 0x14f   :  { %v356_v29 = vsel %vm355_vm4, %v590_v50, %v352_v60  ;;  %v389_v30 = vmul.f32 %v592_v25, %v388_v27 }
 0x150   :  { %411 = vst [vmem:[#allocation7 + $0x30] sm:$0xff] %v403_v28  ;;  %v400_v63 = vmul.f32 %v356_v29, %v732_v9 }
 0x151   :  { %v390_v31 = vmul.f32 0.5, %v389_v30 }
 0x152   :  { %408 = vst [vmem:[#allocation7 + $0x18] sm:$0xff] %v400_v63 }
 0x153   :  { %v391_v32 = vsub.f32 1.5, %v390_v31 }
 0x155   :  { %v392_v33 = vmul.f32 %v592_v25, %v391_v32 }
 0x157   :  { %v396_v6 = vsel %vm395_vm7, %v592_v25, %v392_v33 }
 0x158   :  { %v404_v34 = vmul.f32 %v396_v6, %v738_v15 }
 0x15a   :  { %412 = vst [vmem:[#allocation7 + $0x38] sm:$0xff] %v404_v34 }
 0x15b   :  { %425 = dma.vmem_to_hbm [thread:$0]  %s418_s26, 1024, %s420_s29, [#allocation4], %s672_s20, %s672_s20, %s673_s21  }
 0x15c   :  { %669 = dma.done.wait [#allocation4], 1024  }
 0x15d   :  { %670 = vsyncadd [#allocation4], 4294966272 }
 0x15e   :  { %430 = vsyncpa [#allocation3], 1 }
 0x15f   :  { %431 = vsyncpa [#allocation6], 1 }
 0x160   :  { %432 = vsyncpa [#allocation4], 1 }

</bundles_post_ra>
